<compile_context>
chip_gen: v5e
topology: v5e:2x2
jax: 0.10.0
libtpu: 0.0.40
codegen_flags: <defaults>
</compile_context>

<pallas_src>
import jax
import jax.numpy as jnp
from jax.experimental import pallas as pl
from jax.experimental.pallas import tpu as pltpu

_LANE = 128        # TPU vreg lane width
_SUBLANE = 8       # TPU vreg sublane count (f32)
_MIN_ROWS_PER_CORE = 512   # below this, splitting across v7x TCs isn't worth it


def _qnet_kernel(x_ref, w1_ref, b1_ref, w2_ref, b2_ref, out_ref):
    # Layer 1: MXU matmul with f32 accumulation; bias add + ReLU on the VPU.
    h = jnp.dot(x_ref[...], w1_ref[...], preferred_element_type=jnp.float32)
    h = jnp.maximum(h + b1_ref[...], 0.0)      # b1 is [1, hidden_p] -> broadcasts
    # Layer 2: keep h in f32 (don't discard the f32 accumulation); MXU matmul,
    # bias add, cast to the output dtype.
    o = jnp.dot(h, w2_ref[...], preferred_element_type=jnp.float32)
    out_ref[...] = (o + b2_ref[...]).astype(out_ref.dtype)


def prepare_params(w1, b1, w2, b2):
    """One-time (init / param-update) packing of params for the kernel.

    Zero-pads hidden and output dims up to multiples of 128 lanes and reshapes
    biases to broadcastable [1, N] rows.  Returns (packed_params, out_size).
    Exactness: padded hidden columns produce relu(0) = 0 which multiplies zero
    W2 rows; padded output columns are sliced off after the kernel.
    """
    in_size, hidden = w1.shape
    out_size = w2.shape[1]
    hid_p = max(_LANE, pl.cdiv(hidden, _LANE) * _LANE)
    out_p = max(_LANE, pl.cdiv(out_size, _LANE) * _LANE)

    w1_p = jnp.pad(w1, ((0, 0), (0, hid_p - hidden)))
    b1_p = jnp.pad(b1, (0, hid_p - hidden)).reshape(1, hid_p)
    w2_p = jnp.pad(w2, ((0, hid_p - hidden), (0, out_p - out_size)))
    b2_p = jnp.pad(b2, (0, out_p - out_size)).reshape(1, out_p)
    return (w1_p, b1_p, w2_p, b2_p), out_size


def _pick_batch_tile(batch, block_batch):
    """Pick the batch tile size tm (rows per grid step)."""
    if batch <= block_batch:
        if batch >= 2 * _MIN_ROWS_PER_CORE:
            # Enough work to shard across v7x's two TensorCores: grid == 2.
            half = pl.cdiv(batch, 2)
            return pl.cdiv(half, _SUBLANE) * _SUBLANE
        # Single full-batch tile (block == full array dim is always legal).
        return batch
    # Multiple tiles: tile rows must be a multiple of the 8-row sublane so the
    # (8, 128) block constraint holds even when batch % tm != 0.
    return max(_SUBLANE, (block_batch // _SUBLANE) * _SUBLANE)


def linear_qnet_forward(x, packed_params, out_size, *, block_batch=1024):
    """Fused forward pass: relu(x @ w1 + b1) @ w2 + b2.

    `packed_params` must come from `prepare_params` (padded, 2-D biases).
    Tiles only the batch dimension; weights/biases are VMEM-resident across all
    batch tiles (index map returns block (0, 0) every step).
    """
    w1_p, b1_p, w2_p, b2_p = packed_params
    batch, in_size = x.shape
    hid_p = w1_p.shape[1]
    out_p = w2_p.shape[1]

    tm = _pick_batch_tile(batch, block_batch)
    grid = (pl.cdiv(batch, tm),)

    flops = 2 * batch * (in_size * hid_p + hid_p * out_p)
    bytes_accessed = (
        x.size * x.dtype.itemsize
        + w1_p.size * w1_p.dtype.itemsize + b1_p.size * b1_p.dtype.itemsize
        + w2_p.size * w2_p.dtype.itemsize + b2_p.size * b2_p.dtype.itemsize
        + batch * out_p * x.dtype.itemsize
    )

    out_padded = pl.pallas_call(
        _qnet_kernel,
        out_shape=jax.ShapeDtypeStruct((batch, out_p), x.dtype),
        grid=grid,
        in_specs=[
            # x: tiled along batch only; partial last block handled by Pallas.
            pl.BlockSpec((tm, in_size), lambda i: (i, 0)),
            # Weights/biases: same block for every batch tile -> VMEM-resident.
            pl.BlockSpec((in_size, hid_p), lambda i: (0, 0)),
            pl.BlockSpec((1, hid_p), lambda i: (0, 0)),
            pl.BlockSpec((hid_p, out_p), lambda i: (0, 0)),
            pl.BlockSpec((1, out_p), lambda i: (0, 0)),
        ],
        out_specs=pl.BlockSpec((tm, out_p), lambda i: (i, 0)),
        compiler_params=pltpu.CompilerParams(
            dimension_semantics=("parallel",)),
        cost_estimate=pl.CostEstimate(
            flops=flops, transcendentals=0, bytes_accessed=bytes_accessed),
    )(x, w1_p, b1_p, w2_p, b2_p)

    # Strip the lane padding on the output columns (batch is never padded).
    return out_padded[:, :out_size]


def init_params(key, input_size, hidden_size, output_size):
    """Deterministic init mirroring nn.Linear's U(-1/sqrt(fan_in), 1/sqrt(fan_in))."""
    k1, k2, k3, k4 = jax.random.split(key, 4)
    bound1 = 1.0 / jnp.sqrt(input_size)
    bound2 = 1.0 / jnp.sqrt(hidden_size)
    # Stored transposed relative to PyTorch: [in_features, out_features].
    w1 = jax.random.uniform(k1, (input_size, hidden_size), jnp.float32,
                            -bound1, bound1)
    b1 = jax.random.uniform(k2, (hidden_size,), jnp.float32, -bound1, bound1)
    w2 = jax.random.uniform(k3, (hidden_size, output_size), jnp.float32,
                            -bound2, bound2)
    b2 = jax.random.uniform(k4, (output_size,), jnp.float32, -bound2, bound2)
    return w1, b1, w2, b2


def _reference(x, w1, b1, w2, b2):
    return jnp.maximum(x @ w1 + b1, 0.0) @ w2 + b2


if __name__ == "__main__":
    # Small shapes consistent with Linear_QNet (snake-game Q-net).
    input_size, hidden_size, output_size = 11, 32, 3

    key = jax.random.PRNGKey(0)
    kx1, kx2, kp = jax.random.split(key, 3)
    w1, b1, w2, b2 = init_params(kp, input_size, hidden_size, output_size)

    # Hoisted out of the hot path: pack/pad params once.
    packed, out_size = prepare_params(w1, b1, w2, b2)

    # Case 1: tiny inference-style batch (single full-batch tile, grid = 1).
    x_small = jax.random.normal(kx1, (8, input_size), dtype=jnp.float32)
    out_small = jax.block_until_ready(
        linear_qnet_forward(x_small, packed, out_size))
    ref_small = _reference(x_small, w1, b1, w2, b2)
    assert out_small.shape == (8, output_size)
    assert jnp.allclose(out_small, ref_small, atol=1e-5, rtol=1e-5)

    # Case 2: replay-buffer-sized batch, default tiling (single 200-row tile).
    x_big = jax.random.normal(kx2, (200, input_size), dtype=jnp.float32)
    out_big = jax.block_until_ready(
        linear_qnet_forward(x_big, packed, out_size))
    ref_big = _reference(x_big, w1, b1, w2, b2)
    assert out_big.shape == (200, output_size)
    assert jnp.allclose(out_big, ref_big, atol=1e-5, rtol=1e-5)

    # Case 3: force multi-tile path with a ragged last block (grid = 4, tiles
    # of 64 rows, last block has only 8 valid rows) -- exercises masked
    # partial-block writes with NO wrapper-side batch padding of x.
    out_tiled = jax.block_until_ready(
        linear_qnet_forward(x_big, packed, out_size, block_batch=64))
    assert out_tiled.shape == (200, output_size)
    assert jnp.allclose(out_tiled, ref_big, atol=1e-5, rtol=1e-5)

    print("KERNEL_OK")
</pallas_src>

<mosaic_0001>
module attributes {stable_mosaic.version = 11 : i64} {
  func.func @_qnet_kernel(%arg0: i32, %arg1: memref<8x11xf32, #tpu.memory_space<vmem>>, %arg2: memref<11x128xf32, #tpu.memory_space<vmem>>, %arg3: memref<1x128xf32, #tpu.memory_space<vmem>>, %arg4: memref<128x128xf32, #tpu.memory_space<vmem>>, %arg5: memref<1x128xf32, #tpu.memory_space<vmem>>, %arg6: memref<8x128xf32, #tpu.memory_space<vmem>>) attributes {dimension_semantics = [#tpu.dimension_semantics<parallel>], iteration_bounds = array<i64: 1>, scalar_prefetch = 0 : i64, scratch_operands = 0 : i64, tpu.core_type = #tpu.core_type<tc>, window_params = [{transform_indices = @transform_0, window_bounds = array<i64: 8, 11>}, {pipeline_mode = #tpu.pipeline_mode<synchronous>, transform_indices = @transform_1, window_bounds = array<i64: 11, 128>}, {pipeline_mode = #tpu.pipeline_mode<synchronous>, transform_indices = @transform_2, window_bounds = array<i64: 1, 128>}, {pipeline_mode = #tpu.pipeline_mode<synchronous>, transform_indices = @transform_3, window_bounds = array<i64: 128, 128>}, {pipeline_mode = #tpu.pipeline_mode<synchronous>, transform_indices = @transform_4, window_bounds = array<i64: 1, 128>}, {transform_indices = @transform_5, window_bounds = array<i64: 8, 128>}]} {
    %c0 = arith.constant 0 : index
    %c0_0 = arith.constant 0 : index
    %0 = vector.load %arg1[%c0, %c0_0] : memref<8x11xf32, #tpu.memory_space<vmem>>, vector<8x11xf32>
    %c0_1 = arith.constant 0 : index
    %c0_2 = arith.constant 0 : index
    %1 = vector.load %arg2[%c0_1, %c0_2] : memref<11x128xf32, #tpu.memory_space<vmem>>, vector<11x128xf32>
    %cst = arith.constant dense<0.000000e+00> : vector<8x128xf32>
    %2 = tpu.matmul %0, %1, %cst {dimension_numbers = #tpu.dot_dimension_numbers<[1], [0], [0], [1], [0, 0, 1, 1], [], []>} : vector<8x11xf32>, vector<11x128xf32>, vector<8x128xf32> -> vector<8x128xf32>
    %c0_3 = arith.constant 0 : index
    %c0_4 = arith.constant 0 : index
    %3 = vector.load %arg3[%c0_3, %c0_4] : memref<1x128xf32, #tpu.memory_space<vmem>>, vector<1x128xf32>
    %4 = vector.broadcast %3 : vector<1x128xf32> to vector<8x128xf32>
    %5 = arith.addf %2, %4 : vector<8x128xf32>
    %cst_5 = arith.constant 0.000000e+00 : f32
    %6 = vector.broadcast %cst_5 : f32 to vector<8x128xf32>
    %7 = arith.maximumf %5, %6 : vector<8x128xf32>
    %c0_6 = arith.constant 0 : index
    %c0_7 = arith.constant 0 : index
    %8 = vector.load %arg4[%c0_6, %c0_7] : memref<128x128xf32, #tpu.memory_space<vmem>>, vector<128x128xf32>
    %cst_8 = arith.constant dense<0.000000e+00> : vector<8x128xf32>
    %9 = tpu.matmul %7, %8, %cst_8 {dimension_numbers = #tpu.dot_dimension_numbers<[1], [0], [0], [1], [0, 0, 1, 1], [], []>} : vector<8x128xf32>, vector<128x128xf32>, vector<8x128xf32> -> vector<8x128xf32>
    %c0_9 = arith.constant 0 : index
    %c0_10 = arith.constant 0 : index
    %10 = vector.load %arg5[%c0_9, %c0_10] : memref<1x128xf32, #tpu.memory_space<vmem>>, vector<1x128xf32>
    %11 = vector.broadcast %10 : vector<1x128xf32> to vector<8x128xf32>
    %12 = arith.addf %9, %11 : vector<8x128xf32>
    %c0_11 = arith.constant 0 : index
    %c0_12 = arith.constant 0 : index
    %13 = vector.load %arg6[%c0_11, %c0_12] : memref<8x128xf32, #tpu.memory_space<vmem>>, vector<8x128xf32>
    tpu.vector_store %arg6[%c0_11, %c0_12], %12 {strides = array<i32>} : memref<8x128xf32, #tpu.memory_space<vmem>>, vector<8x128xf32>,
    return
  }
  func.func @transform_0(%arg0: i32) -> (i32, i32) {
    %c0_i32 = arith.constant 0 : i32
    %c0_i32_0 = arith.constant 0 : i32
    return %arg0, %c0_i32 : i32, i32
  }
  func.func @transform_1(%arg0: i32) -> (i32, i32) {
    %c0_i32 = arith.constant 0 : i32
    %c0_i32_0 = arith.constant 0 : i32
    %c0_i32_1 = arith.constant 0 : i32
    return %c0_i32, %c0_i32_0 : i32, i32
  }
  func.func @transform_2(%arg0: i32) -> (i32, i32) {
    %c0_i32 = arith.constant 0 : i32
    %c0_i32_0 = arith.constant 0 : i32
    %c0_i32_1 = arith.constant 0 : i32
    return %c0_i32, %c0_i32_0 : i32, i32
  }
  func.func @transform_3(%arg0: i32) -> (i32, i32) {
    %c0_i32 = arith.constant 0 : i32
    %c0_i32_0 = arith.constant 0 : i32
    %c0_i32_1 = arith.constant 0 : i32
    return %c0_i32, %c0_i32_0 : i32, i32
  }
  func.func @transform_4(%arg0: i32) -> (i32, i32) {
    %c0_i32 = arith.constant 0 : i32
    %c0_i32_0 = arith.constant 0 : i32
    %c0_i32_1 = arith.constant 0 : i32
    return %c0_i32, %c0_i32_0 : i32, i32
  }
  func.func @transform_5(%arg0: i32) -> (i32, i32) {
    %c0_i32 = arith.constant 0 : i32
    %c0_i32_0 = arith.constant 0 : i32
    return %arg0, %c0_i32 : i32, i32
  }
}

</mosaic_0001>

<bundles_post_ra>
// kernel: tpu_custom_call.1
= control target key start
LH: loop header
LB: loop body
LE: loop exit
PB: predicated region body
PF: predicated region fallthrough
CT: control target
= control target key end

     0   :  { %10 = vsyncpa [#allocation3], 0  ;;  %s327_s0 = inlined_call_operand.hbm [shape: f32[8,11], index: 0, kind: input, shape index: {}]   ;;  %s328_s1 = inlined_call_operand.hbm [shape: f32[11,128], index: 1, kind: input, shape index: {}]   ;;  %s329_s2 = inlined_call_operand.vmem [shape: f32[1,128], index: 2, kind: input, shape index: {}]   ;;  %s330_s3 = inlined_call_operand.hbm [shape: f32[128,128], index: 3, kind: input, shape index: {}]   ;;  %s331_s4 = inlined_call_operand.vmem [shape: f32[1,128], index: 4, kind: input, shape index: {}]   ;;  %s332_s5 = inlined_call_operand.hbm [shape: f32[8,128], index: 5, kind: output, shape index: {}]  }
   0x1   :  { %11 = vsyncpa [#allocation6], 0  ;;  %s28_s20 = sshll.u32 %s328_s1, 4  ;;  %s29_s20 = int_to_ptr.hbm [resolvable:$true] %s28_s20 }
   0x2   :  { %12 = vsyncpa [#allocation4], 0  ;;  %s273_s21 = smov [#allocation5]   ;;  %s18_s25 = sshll.u32 %s327_s0, 4  ;;  %s19_s25 = int_to_ptr.hbm [resolvable:$true] %s18_s25 }
   0x3   :  { %s30_s22 = sshll.u32 %s273_s21, 4  ;;  %s274_s26 = smov 128   ;;  %s31_s22 = int_to_ptr.vmem [resolvable:$true] %s30_s22 }
   0x4   :  { %s275_s27 = smov 8   ;;  %s276_s28 = smov [#allocation2]  }
   0x5   :  { %36 = dma.hbm_to_vmem [thread:$0]  %s29_s20, 256, %s31_s22, [#allocation6], %s274_s26, %s274_s26, %s275_s27  }
   0x6   :  { %s20_s29 = sshll.u32 %s276_s28, 4  ;;  %s43_s7 = sshll.u32 %s330_s3, 4  ;;  %s21_s29 = int_to_ptr.vmem [resolvable:$true] %s20_s29  ;;  %s44_s7 = int_to_ptr.hbm [resolvable:$true] %s43_s7 }
   0x7   :  { %23 = dma.hbm_to_vmem [thread:$0]  %s19_s25, 128, %s21_s29, [#allocation3]  }
   0x8   :  { %s277_s1 = smov [#allocation7]  }
   0x9   :  { %s45_s8 = sshll.u32 %s277_s1, 4  ;;  %s46_s8 = int_to_ptr.vmem [resolvable:$true] %s45_s8 }
   0xa   :  { %51 = dma.hbm_to_vmem [thread:$0]  %s44_s7, 2048, %s46_s8, [#allocation6], %s274_s26, %s274_s26, %s275_s27  }
   0xb   :  { %267 = dma.done.wait [#allocation3], 128  }
   0xc   :  { %268 = vsyncadd [#allocation3], 4294967168 }
   0xd   :  { %269 = dma.done.wait [#allocation6], 2304  }
   0xe   :  { %270 = vsyncadd [#allocation6], 4294964992  ;;  %vm77_vm0 = vcmask 1042432   ;;  %v68_v0 = vld [vmem:[#allocation5 + $0x8] sm:$0x7]  ;;  %v67_v1 = vld [vmem:[#allocation5] sm:$0xff] }
   0xf   :  { %161 = vmatpush.msk.msra.mxu0 %vm77_vm0, %v68_v0  ;;  %v66_v2 = vld [vmem:[#allocation2] sm:$0xff]  ;;  %vm73_vm1 = vcmask 89088   ;;  %v117_v3 = vld [vmem:[#allocation7 + $0x78] sm:$0xff]  ;;  %v116_v4 = vld [vmem:[#allocation7 + $0x70] sm:$0xff]  ;;  %s278_s11 = smov [#allocation8]   ;;  %s150_s15 = sshll.u32 %s332_s5, 4  ;;  %s151_s15 = int_to_ptr.hbm [resolvable:$true] %s150_s15 }
  0x10   :  { %122 = vmatpush.msra.mxu1 %v117_v3  ;;  %v115_v5 = vld [vmem:[#allocation7 + $0x68] sm:$0xff]  ;;  %v114_v6 = vld [vmem:[#allocation7 + $0x60] sm:$0xff]  ;;  %v113_v7 = vld [vmem:[#allocation7 + $0x58] sm:$0xff]  ;;  %s148_s12 = sshll.u32 %s278_s11, 4  ;;  %s149_s12 = int_to_ptr.vmem [resolvable:$true] %s148_s12 }
  0x11   :  { %96 = vmatpush.msra.mxu0 %v67_v1  ;;  %v112_v8 = vld [vmem:[#allocation7 + $0x50] sm:$0xff]  ;;  %v111_v9 = vld [vmem:[#allocation7 + $0x48] sm:$0xff]  ;;  %v110_v10 = vld [vmem:[#allocation7 + $0x40] sm:$0xff] }
  0x12   :  { %162 = vmatmul.msk.f32.vlgmr.msra.gmra.mxu0 %vm73_vm1, %v66_v2  ;;  %123 = vmatpush.msra.mxu1 %v116_v4  ;;  %v109_v11 = vld [vmem:[#allocation7 + $0x38] sm:$0xff]  ;;  %v108_v12 = vld [vmem:[#allocation7 + $0x30] sm:$0xff]  ;;  %v107_v13 = vld [vmem:[#allocation7 + $0x28] sm:$0xff] }
  0x13   :  { %v106_v14 = vld [vmem:[#allocation7 + $0x20] sm:$0xff]  ;;  %v105_v15 = vld [vmem:[#allocation7 + $0x18] sm:$0xff]  ;;  %v104_v16 = vld [vmem:[#allocation7 + $0x10] sm:$0xff] }
  0x14   :  { %124 = vmatpush.msra.mxu1 %v115_v5  ;;  %v103_v17 = vld [vmem:[#allocation7 + $0x8] sm:$0xff]  ;;  %v102_v18 = vld [vmem:[#allocation7] sm:$0xff] }
  0x15   :  { %v169_v19 = vld [vmem:[%s329_s2] ss:$0 sm:$0xff] }
  0x16   :  { %125 = vmatpush.msra.mxu1 %v114_v6  ;;  %v170_v23 = vld [vmem:[%s331_s4] ss:$0 sm:$0xff] }
  0x18   :  { %126 = vmatpush.msra.mxu1 %v113_v7 }
  0x1a   :  { %127 = vmatpush.msra.mxu1 %v112_v8 }
  0x1c   :  { %128 = vmatpush.msra.mxu1 %v111_v9 }
  0x1e   :  { %129 = vmatpush.msra.mxu1 %v110_v10 }
  0x20   :  { %130 = vmatpush.msra.mxu1 %v109_v11 }
  0x22   :  { %131 = vmatpush.msra.mxu1 %v108_v12 }
  0x24   :  { %132 = vmatpush.msra.mxu1 %v107_v13 }
  0x26   :  { %133 = vmatpush.msra.mxu1 %v106_v14 }
  0x28   :  { %134 = vmatpush.msra.mxu1 %v105_v15 }
  0x2a   :  { %135 = vmatpush.msra.mxu1 %v104_v16 }
  0x2c   :  { %136 = vmatpush.msra.mxu1 %v103_v17 }
  0x2e   :  { %137 = vmatpush.msra.mxu1 %v102_v18 }
  0x8f   :  { %v98_v20 = vpop.f32.mrf.mxu0 }
  0x90   :  { %v99_v21 = vadd.f32 %v169_v19, %v98_v20 }
  0x92   :  { %v101_v22 = vmax.f32 %v99_v21, 0.0 }
  0x94   :  { %138 = vmatmul.f32.vlgmr.msra.gmra.mxu1 %v101_v22 }
 0x111   :  { %v139_v24 = vpop.f32.mrf.mxu1 }
 0x112   :  { %v140_v25 = vadd.f32 %v170_v23, %v139_v24 }
 0x114   :  { %142 = vst [vmem:[#allocation8] sm:$0xff] %v140_v25 }
 0x115   :  { %153 = dma.vmem_to_hbm [thread:$0]  %s149_s12, 128, %s151_s15, [#allocation4]  }
 0x116   :  { %271 = dma.done.wait [#allocation4], 128  }
 0x117   :  { %272 = vsyncadd [#allocation4], 4294967168 }
 0x118   :  { %158 = vsyncpa [#allocation3], 1 }
 0x119   :  { %159 = vsyncpa [#allocation6], 1 }
 0x11a   :  { %160 = vsyncpa [#allocation4], 1 }

</bundles_post_ra>
